<compile_context>
chip_gen: v5e
topology: v5e:2x2
jax: 0.10.0
libtpu: 0.0.40
codegen_flags: <defaults>
</compile_context>

<pallas_src>
import functools
import math

import jax
import jax.numpy as jnp
from jax.experimental import pallas as pl
from jax.experimental.pallas import tpu as pltpu


_VMEM_LIMIT = 32 * 1024 * 1024        # safe scoped limit on v5e / v6e / v7x
_FUSED_VMEM_GATE = 24 * 1024 * 1024   # take the fused path only below this estimate
_TARGET_TILE_BYTES = 4 * 1024 * 1024  # ~roofline-optimal streamed slab size


# ---------------------------------------------------------------------------
# Fused kernel: one grid step per batch element (reads x from HBM once).
# ---------------------------------------------------------------------------
def _fused_cca_kernel(x_ref, g_ref, w_ref, b_ref, o_ref):
    x = x_ref[0].astype(jnp.float32)                       # (Cx, Sx)
    g = g_ref[0].astype(jnp.float32)                       # (Cg, Sg)
    pooled_x = jnp.mean(x, axis=-1, keepdims=True)         # (Cx, 1)
    pooled_g = jnp.mean(g, axis=-1, keepdims=True)         # (Cg, 1)
    pooled = jnp.concatenate([pooled_x, pooled_g], axis=0)  # (Cx+Cg, 1)
    # Column-form matmul: W_cat @ pooled -> (Cx, 1); bias is (bx+bg) as (Cx,1).
    att = jnp.dot(w_ref[...], pooled,
                  preferred_element_type=jnp.float32) + b_ref[...]
    scale = jax.nn.sigmoid(att * 0.5)                       # (Cx, 1)
    # Note: for S < 128 the stores are lane-masked; repacking to a lane-dense
    # layout would need an extra relayout pass, so we keep the fused single-read
    # structure which dominates at any non-trivial spatial size.
    o_ref[0] = jnp.maximum(x * scale, 0.0).astype(o_ref.dtype)


# ---------------------------------------------------------------------------
# Fallback kernels (large spatial volumes): byte-sized row/spatial tiles.
# ---------------------------------------------------------------------------
def _pick_tiles(n_rows, n_cols, target_bytes=_TARGET_TILE_BYTES):
    """Tile (rows, cols) so each streamed block is ~target_bytes (f32)."""
    elem = 4
    if 8 * n_cols * elem <= target_bytes:
        tile_s = n_cols                                   # full spatial width
    else:
        tile_s = max(128, (target_bytes // (8 * elem)) // 128 * 128)
        tile_s = min(tile_s, ((n_cols + 127) // 128) * 128)
    max_rows = max(8, (target_bytes // (tile_s * elem)) // 8 * 8)
    tile_r = n_rows if n_rows <= max_rows else max_rows
    return tile_r, tile_s


def _make_row_mean_kernel(s_total, tile_s):
    """[T, S] -> [T, 1] mean, tiled over (rows, spatial); spatial is a reduction."""
    need_mask = (s_total % tile_s) != 0
    inv_s = 1.0 / float(s_total)

    def kernel(x_ref, o_ref, acc_ref):
        j = pl.program_id(1)

        @pl.when(j == 0)
        def _():
            acc_ref[...] = jnp.zeros_like(acc_ref)

        x = x_ref[...].astype(jnp.float32)
        if need_mask:
            lane = jax.lax.broadcasted_iota(jnp.int32, x.shape, 1) + j * tile_s
            x = jnp.where(lane < s_total, x, 0.0)
        acc_ref[...] += jnp.sum(x, axis=-1, keepdims=True)

        @pl.when(j == pl.num_programs(1) - 1)
        def _():
            o_ref[...] = (acc_ref[...] * inv_s).astype(o_ref.dtype)

    return kernel


def _row_mean(x2d):
    t, s = x2d.shape
    tile_r, tile_s = _pick_tiles(t, s)
    return pl.pallas_call(
        _make_row_mean_kernel(s, tile_s),
        out_shape=jax.ShapeDtypeStruct((t, 1), jnp.float32),
        grid_spec=pltpu.PrefetchScalarGridSpec(
            num_scalar_prefetch=0,
            grid=(pl.cdiv(t, tile_r), pl.cdiv(s, tile_s)),
            in_specs=[pl.BlockSpec((tile_r, tile_s), lambda i, j: (i, j))],
            out_specs=pl.BlockSpec((tile_r, 1), lambda i, j: (i, 0)),
            scratch_shapes=[pltpu.VMEM((tile_r, 1), jnp.float32)],
        ),
        compiler_params=pltpu.CompilerParams(
            dimension_semantics=("parallel", "arbitrary"),
            vmem_limit_bytes=_VMEM_LIMIT),
    )(x2d)


def _apply_kernel(x_ref, scale_ref, o_ref):
    o_ref[...] = jnp.maximum(x_ref[...] * scale_ref[...], 0.0).astype(o_ref.dtype)


# ---------------------------------------------------------------------------
# Full CCA forward.
# ---------------------------------------------------------------------------
@functools.partial(jax.jit, static_argnames=("force_fallback",))
def cca_pallas(g, x, wx, bx, wg, bg, force_fallback=False):
    """g: [B, F_g, Dg, Hg, Wg]; x: [B, F_x, Dx, Hx, Wx].
    wx: [F_x, F_x], wg: [F_x, F_g] (nn.Linear native [out, in]); bx, bg: [F_x]."""
    b = x.shape[0]
    cx, cg = x.shape[1], g.shape[1]
    sx = math.prod(x.shape[2:])
    sg = math.prod(g.shape[2:])

    # Estimated fused-path VMEM (double-buffered x in/out, g in, resident weights).
    fused_vmem = 4 * (2 * (2 * cx * sx + cg * sg) + 2 * (cx * (cx + cg) + cx))

    if not force_fallback and fused_vmem <= _FUSED_VMEM_GATE:
        # ---------------- fused single-pass path ----------------
        x3 = x.reshape(b, cx, sx)
        g3 = g.reshape(b, cg, sg)
        w_cat = jnp.concatenate([wx, wg], axis=1).astype(jnp.float32)  # (Cx, Cx+Cg)
        b_sum = (bx + bg).reshape(cx, 1).astype(jnp.float32)           # (Cx, 1)

        out3 = pl.pallas_call(
            _fused_cca_kernel,
            out_shape=jax.ShapeDtypeStruct((b, cx, sx), x.dtype),
            grid_spec=pltpu.PrefetchScalarGridSpec(
                num_scalar_prefetch=0,
                grid=(b,),
                in_specs=[
                    pl.BlockSpec((1, cx, sx), lambda i: (i, 0, 0)),
                    pl.BlockSpec((1, cg, sg), lambda i: (i, 0, 0)),
                    pl.BlockSpec((cx, cx + cg), lambda i: (0, 0)),
                    pl.BlockSpec((cx, 1), lambda i: (0, 0)),
                ],
                out_specs=pl.BlockSpec((1, cx, sx), lambda i: (i, 0, 0)),
            ),
            compiler_params=pltpu.CompilerParams(
                dimension_semantics=("parallel",),
                vmem_limit_bytes=_VMEM_LIMIT),
        )(x3, g3, w_cat, b_sum)
        return out3.reshape(x.shape)

    # ---------------- fallback: tiled 3-pass path ----------------
    x2 = x.reshape(b * cx, sx)
    g2 = g.reshape(b * cg, sg)

    pooled_x = _row_mean(x2).reshape(b, cx)
    pooled_g = _row_mean(g2).reshape(b, cg)

    # Tiny attention matmul + sigmoid in plain jnp (B x F @ F x F is negligible).
    att = pooled_x @ wx.T + bx + pooled_g @ wg.T + bg
    scale_rows = jax.nn.sigmoid(att * 0.5).astype(jnp.float32).reshape(b * cx, 1)

    t = b * cx
    tile_r, tile_s = _pick_tiles(t, sx)
    out2 = pl.pallas_call(
        _apply_kernel,
        out_shape=jax.ShapeDtypeStruct((t, sx), x.dtype),
        grid_spec=pltpu.PrefetchScalarGridSpec(
            num_scalar_prefetch=0,
            grid=(pl.cdiv(t, tile_r), pl.cdiv(sx, tile_s)),
            in_specs=[
                pl.BlockSpec((tile_r, tile_s), lambda i, j: (i, j)),
                pl.BlockSpec((tile_r, 1), lambda i, j: (i, 0)),
            ],
            out_specs=pl.BlockSpec((tile_r, tile_s), lambda i, j: (i, j)),
        ),
        compiler_params=pltpu.CompilerParams(
            dimension_semantics=("parallel", "parallel"),
            vmem_limit_bytes=_VMEM_LIMIT),
    )(x2, scale_rows)
    return out2.reshape(x.shape)


# ---------------------------------------------------------------------------
# Pure-JAX reference.
# ---------------------------------------------------------------------------
def _ref_cca(g, x, wx, bx, wg, bg):
    pooled_x = jnp.mean(x, axis=(2, 3, 4))
    pooled_g = jnp.mean(g, axis=(2, 3, 4))
    att = pooled_x @ wx.T + bx + pooled_g @ wg.T + bg
    scale = jax.nn.sigmoid(att / 2.0)[:, :, None, None, None]
    return jnp.maximum(x * scale, 0.0)


if __name__ == "__main__":
    batch = 2
    f_x, f_g = 32, 48
    dx = hx = wx_sp = 4
    dg = hg = wg_sp = 4

    key = jax.random.PRNGKey(0)
    kx, kg, kwx, kbx, kwg, kbg = jax.random.split(key, 6)

    x = jax.random.normal(kx, (batch, f_x, dx, hx, wx_sp), dtype=jnp.float32)
    g = jax.random.normal(kg, (batch, f_g, dg, hg, wg_sp), dtype=jnp.float32)

    # nn.Linear weights in native [out, in] layout; deterministic init.
    wx = jax.random.normal(kwx, (f_x, f_x), jnp.float32) * 0.05
    bx = jax.random.normal(kbx, (f_x,), jnp.float32) * 0.01
    wg = jax.random.normal(kwg, (f_x, f_g), jnp.float32) * 0.05
    bg = jax.random.normal(kbg, (f_x,), jnp.float32) * 0.01

    y_ref = _ref_cca(g, x, wx, bx, wg, bg)

    # Default (fused single-pass) path.
    y = jax.block_until_ready(cca_pallas(g, x, wx, bx, wg, bg))
    assert y.shape == x.shape
    assert jnp.allclose(y, y_ref, atol=1e-5, rtol=1e-5), "fused path mismatch"

    # Tiled fallback path (auto-selected for very large spatial volumes).
    y2 = jax.block_until_ready(cca_pallas(g, x, wx, bx, wg, bg, force_fallback=True))
    assert jnp.allclose(y2, y_ref, atol=1e-5, rtol=1e-5), "fallback path mismatch"

    print("KERNEL_OK")
</pallas_src>

<mosaic_0001>
module attributes {stable_mosaic.version = 11 : i64} {
  func.func @_fused_cca_kernel(%arg0: i32, %arg1: memref<1x32x64xf32, #tpu.memory_space<vmem>>, %arg2: memref<1x48x64xf32, #tpu.memory_space<vmem>>, %arg3: memref<32x80xf32, #tpu.memory_space<vmem>>, %arg4: memref<32x1xf32, #tpu.memory_space<vmem>>, %arg5: memref<1x32x64xf32, #tpu.memory_space<vmem>>) attributes {dimension_semantics = [#tpu.dimension_semantics<parallel>], iteration_bounds = array<i64: 2>, scalar_prefetch = 0 : i64, scratch_operands = 0 : i64, tpu.core_type = #tpu.core_type<tc>, window_params = [{transform_indices = @transform_0, window_bounds = array<i64: 1, 32, 64>}, {transform_indices = @transform_1, window_bounds = array<i64: 1, 48, 64>}, {pipeline_mode = #tpu.pipeline_mode<synchronous>, transform_indices = @transform_2, window_bounds = array<i64: 32, 80>}, {pipeline_mode = #tpu.pipeline_mode<synchronous>, transform_indices = @transform_3, window_bounds = array<i64: 32, 1>}, {transform_indices = @transform_4, window_bounds = array<i64: 1, 32, 64>}]} {
    %c0 = arith.constant 0 : index
    %c0_0 = arith.constant 0 : index
    %c0_1 = arith.constant 0 : index
    %0 = vector.load %arg1[%c0, %c0_0, %c0_1] : memref<1x32x64xf32, #tpu.memory_space<vmem>>, vector<1x32x64xf32>
    %1 = vector.shape_cast %0 : vector<1x32x64xf32> to vector<32x64xf32>
    %c0_2 = arith.constant 0 : index
    %c0_3 = arith.constant 0 : index
    %c0_4 = arith.constant 0 : index
    %2 = vector.load %arg2[%c0_2, %c0_3, %c0_4] : memref<1x48x64xf32, #tpu.memory_space<vmem>>, vector<1x48x64xf32>
    %3 = vector.shape_cast %2 : vector<1x48x64xf32> to vector<48x64xf32>
    %cst = arith.constant dense<0.000000e+00> : vector<32xf32>
    %4 = vector.multi_reduction <add>, %1, %cst [1] : vector<32x64xf32> to vector<32xf32>
    %5 = vector.shape_cast %4 : vector<32xf32> to vector<32x1xf32>
    %cst_5 = arith.constant 6.400000e+01 : f32
    %6 = vector.broadcast %cst_5 : f32 to vector<32x1xf32>
    %7 = arith.divf %5, %6 : vector<32x1xf32>
    %cst_6 = arith.constant dense<0.000000e+00> : vector<48xf32>
    %8 = vector.multi_reduction <add>, %3, %cst_6 [1] : vector<48x64xf32> to vector<48xf32>
    %9 = vector.shape_cast %8 : vector<48xf32> to vector<48x1xf32>
    %cst_7 = arith.constant 6.400000e+01 : f32
    %10 = vector.broadcast %cst_7 : f32 to vector<48x1xf32>
    %11 = arith.divf %9, %10 : vector<48x1xf32>
    %12 = tpu.concatenate %7, %11 in 0 : vector<32x1xf32>, vector<48x1xf32> -> vector<80x1xf32>
    %c0_8 = arith.constant 0 : index
    %c0_9 = arith.constant 0 : index
    %13 = vector.load %arg3[%c0_8, %c0_9] : memref<32x80xf32, #tpu.memory_space<vmem>>, vector<32x80xf32>
    %cst_10 = arith.constant dense<0.000000e+00> : vector<32x1xf32>
    %14 = tpu.matmul %13, %12, %cst_10 {dimension_numbers = #tpu.dot_dimension_numbers<[1], [0], [0], [1], [0, 0, 1, 1], [], []>} : vector<32x80xf32>, vector<80x1xf32>, vector<32x1xf32> -> vector<32x1xf32>
    %c0_11 = arith.constant 0 : index
    %c0_12 = arith.constant 0 : index
    %15 = vector.load %arg4[%c0_11, %c0_12] : memref<32x1xf32, #tpu.memory_space<vmem>>, vector<32x1xf32>
    %16 = arith.addf %14, %15 : vector<32x1xf32>
    %cst_13 = arith.constant 5.000000e-01 : f32
    %17 = vector.broadcast %cst_13 : f32 to vector<32x1xf32>
    %18 = arith.mulf %16, %17 : vector<32x1xf32>
    %19 = arith.negf %18 : vector<32x1xf32>
    %20 = math.exp %19 : vector<32x1xf32>
    %cst_14 = arith.constant 1.000000e+00 : f32
    %21 = vector.broadcast %cst_14 : f32 to vector<32x1xf32>
    %22 = arith.addf %21, %20 : vector<32x1xf32>
    %23 = arith.divf %21, %22 : vector<32x1xf32>
    %24 = vector.broadcast %23 : vector<32x1xf32> to vector<32x64xf32>
    %25 = arith.mulf %1, %24 : vector<32x64xf32>
    %cst_15 = arith.constant 0.000000e+00 : f32
    %26 = vector.broadcast %cst_15 : f32 to vector<32x64xf32>
    %27 = arith.maximumf %25, %26 : vector<32x64xf32>
    %c0_16 = arith.constant 0 : index
    %c0_17 = arith.constant 0 : index
    %c0_18 = arith.constant 0 : index
    %28 = vector.load %arg5[%c0_16, %c0_17, %c0_18] : memref<1x32x64xf32, #tpu.memory_space<vmem>>, vector<1x32x64xf32>
    %29 = vector.shape_cast %28 : vector<1x32x64xf32> to vector<32x64xf32>
    %30 = vector.shape_cast %27 : vector<32x64xf32> to vector<1x32x64xf32>
    tpu.vector_store %arg5[%c0_16, %c0_17, %c0_18], %30 {strides = array<i32>} : memref<1x32x64xf32, #tpu.memory_space<vmem>>, vector<1x32x64xf32>,
    return
  }
  func.func @transform_0(%arg0: i32) -> (i32, i32, i32) {
    %c0_i32 = arith.constant 0 : i32
    %c0_i32_0 = arith.constant 0 : i32
    %c0_i32_1 = arith.constant 0 : i32
    return %arg0, %c0_i32, %c0_i32_0 : i32, i32, i32
  }
  func.func @transform_1(%arg0: i32) -> (i32, i32, i32) {
    %c0_i32 = arith.constant 0 : i32
    %c0_i32_0 = arith.constant 0 : i32
    %c0_i32_1 = arith.constant 0 : i32
    return %arg0, %c0_i32, %c0_i32_0 : i32, i32, i32
  }
  func.func @transform_2(%arg0: i32) -> (i32, i32) {
    %c0_i32 = arith.constant 0 : i32
    %c0_i32_0 = arith.constant 0 : i32
    %c0_i32_1 = arith.constant 0 : i32
    return %c0_i32, %c0_i32_0 : i32, i32
  }
  func.func @transform_3(%arg0: i32) -> (i32, i32) {
    %c0_i32 = arith.constant 0 : i32
    %c0_i32_0 = arith.constant 0 : i32
    %c0_i32_1 = arith.constant 0 : i32
    return %c0_i32, %c0_i32_0 : i32, i32
  }
  func.func @transform_4(%arg0: i32) -> (i32, i32, i32) {
    %c0_i32 = arith.constant 0 : i32
    %c0_i32_0 = arith.constant 0 : i32
    %c0_i32_1 = arith.constant 0 : i32
    return %arg0, %c0_i32, %c0_i32_0 : i32, i32, i32
  }
}

</mosaic_0001>

<bundles_post_ra>
// kernel: cca_pallas.1
= control target key start
LH: loop header
LB: loop body
LE: loop exit
PB: predicated region body
PF: predicated region fallthrough
CT: control target
= control target key end

     0   :  { %s624_s15 = smov 0   ;;  %s725_s0 = inlined_call_operand.vmem [shape: f32[2,32,64], index: 0, kind: input, shape index: {}]   ;;  %s726_s1 = inlined_call_operand.vmem [shape: f32[2,48,64], index: 1, kind: input, shape index: {}]   ;;  %s727_s2 = inlined_call_operand.vmem [shape: f32[32,80], index: 2, kind: input, shape index: {}]   ;;  %s728_s3 = inlined_call_operand.vmem [shape: f32[32,1], index: 3, kind: input, shape index: {}]   ;;  %s729_s4 = inlined_call_operand.vmem [shape: f32[2,32,64], index: 4, kind: output, shape index: {}]  }
   0x1 LB: > { %s505_s16 = sadd.s32 4294967295, %s595_s15   ;;  %p509_p0 = scmp.ge.s32.totalorder %s595_s15, 1  ;;  %s595_s15 = sphi %s624_s15, %s14_s15  }
   0x2   : > { %p172_p1 = scmp.lt.s32.totalorder %s595_s15, 3 }
   0x4   : > { %p173_p2 = pnand %p509_p0, %p172_p1 }
   0x5   : > { %p203_p3 = scmp.lt.s32.totalorder (!%p173_p2), %s505_s16, 1 }
   0x6   : > { %176 = sbr.rel (%p173_p2) target bundleno = 445 (0x1bd), region = 36 }
   0xb   : > { %s737_s16 = smov (!%p203_p3, %s505_s16), 1  ;;  %vm228_vm0 = vcmask 523264   ;;  %v597_v20 = vmov 64.0   ;;  %v276_v47 = vld [vmem:[%s727_s2] sm:$0xff]  ;;  %vm284_vm2 = vcmask 654336   ;;  %v278_v48 = vld [vmem:[%s727_s2 + $0x10] sm:$0xff] }
   0xc   : > { %s557_s17 = smul.u32 48, %s737_s16  ;;  %s525_s21 = sshll.u32 %s737_s16, 5  ;;  %571 = vrcp.f32 %v597_v20  ;;  %v277_v49 = vld [vmem:[%s727_s2 + $0x8] sm:$0xff]  ;;  %v279_v50 = vld [vmem:[%s727_s2 + $0x18] sm:$0xff]  ;;  %v598_v51 = vmov 0   ;;  %v280_v52 = vld [vmem:[%s728_s3] sm:$0xff] }
   0xd   : > { %s207_s24 = scalar_lea.vmem %s725_s0, %s525_s21  ;;  %568 = vset.pattern.permute.xlu1 %v598_v51  ;;  %570 = vset.pattern.permute.xlu0 %v598_v51  ;;  %v281_v53 = vld [vmem:[%s728_s3 + $0x8] sm:$0xff]  ;;  %v282_v59 = vld [vmem:[%s728_s3 + $0x10] sm:$0xff]  ;;  %v283_v62 = vld [vmem:[%s728_s3 + $0x18] sm:$0xff]  ;;  %s217_s19 = scalar_lea.vmem %s729_s4, %s525_s21 }
   0xe   : > { %s212_s20 = scalar_lea.vmem %s726_s1, %s557_s17  ;;  %v650_v12 = vld [vmem:[%s207_s24 + $0x18] sm:$0xff]  ;;  %v652_v13 = vld [vmem:[%s207_s24 + $0x10] sm:$0xff]  ;;  %v654_v14 = vld [vmem:[%s207_s24 + $0x8] sm:$0xff]  ;;  %569 = vset.pattern.permute.xlu2 %v598_v51 }
   0xf   : > { %v227_v0 = vld [vmem:[%s212_s20 + $0x28] sm:$0xff]  ;;  %v225_v1 = vld [vmem:[%s212_s20 + $0x18] sm:$0xff]  ;;  %v226_v6 = vld [vmem:[%s212_s20 + $0x20] sm:$0xff]  ;;  %v238_v15 = vsel %vm228_vm0, %v650_v12, 0.0  ;;  %v235_v16 = vsel %vm228_vm0, %v652_v13, 0.0  ;;  %v232_v17 = vsel %vm228_vm0, %v654_v14, 0.0 }
  0x10   : > { %v223_v2 = vld [vmem:[%s212_s20 + $0x8] sm:$0xff]  ;;  %v267_v3 = vsel %vm228_vm0, %v227_v0, 0.0  ;;  %v261_v4 = vsel %vm228_vm0, %v225_v1, 0.0  ;;  %v224_v7 = vld [vmem:[%s212_s20 + $0x10] sm:$0xff]  ;;  %v222_v8 = vld [vmem:[%s212_s20] sm:$0xff]  ;;  %v264_v9 = vsel %vm228_vm0, %v226_v6, 0.0 }
  0x11   : > { %v255_v5 = vsel %vm228_vm0, %v223_v2, 0.0  ;;  %268 = vadd.xlane.f32.xlu0 %v267_v3  ;;  %262 = vadd.xlane.f32.xlu1 %v261_v4  ;;  %v258_v10 = vsel %vm228_vm0, %v224_v7, 0.0  ;;  %v252_v11 = vsel %vm228_vm0, %v222_v8, 0.0  ;;  %v662_v18 = vld [vmem:[%s207_s24] sm:$0xff] }
  0x12   : > { %256 = vadd.xlane.f32.xlu2 %v255_v5  ;;  %v229_v19 = vsel %vm228_vm0, %v662_v18, 0.0  ;;  %v572_v21 = vpop.eup %571 }
  0x13   : > { %v242_v22 = vmul.f32 64.0, %v572_v21  ;;  %vm246_vm1 = vweird.f32 %v572_v21 }
  0x15   : > { %v243_v23 = vsub.f32 1.0, %v242_v22 }
  0x17   : > { %v244_v24 = vmul.f32 %v572_v21, %v243_v23 }
  0x19   : > { %265 = vadd.xlane.f32.xlu0 %v264_v9  ;;  %259 = vadd.xlane.f32.xlu1 %v258_v10  ;;  %v245_v25 = vadd.f32 %v572_v21, %v244_v24 }
  0x1a   : > { %253 = vadd.xlane.f32.xlu2 %v252_v11 }
  0x1b   : > { %v247_v26 = vsel %vm246_vm1, %v572_v21, %v245_v25 }
  0x21   : > { %239 = vadd.xlane.f32.xlu0 %v238_v15  ;;  %236 = vadd.xlane.f32.xlu1 %v235_v16 }
  0x22   : > { %233 = vadd.xlane.f32.xlu2 %v232_v17 }
  0x29   : > { %230 = vadd.xlane.f32.xlu0 %v229_v19 }
  0x84   : > { %v269_v27 = vpop.xlane.xlu0 %268  ;;  %v263_v28 = vpop.xlane.xlu1 %262 }
  0x85   : > { %v275_v29 = vmul.f32 %v269_v27, %v247_v26  ;;  %v257_v30 = vpop.xlane.xlu2 %256  ;;  %v273_v35 = vmul.f32 %v263_v28, %v247_v26 }
  0x86   : > { %v271_v37 = vmul.f32 %v257_v30, %v247_v26 }
  0x87   : > { %303 = vmatpush.msra.mxu0 %v275_v29  ;;  %527 = vmatpush.msra.mxu1 %v275_v29 }
  0x88   : > { %528 = vmatpush.msra.mxu2 %v275_v29  ;;  %529 = vmatpush.msra.mxu3 %v275_v29 }
  0x8c   : > { %v266_v31 = vpop.xlane.xlu0 %265  ;;  %v260_v32 = vpop.xlane.xlu1 %259 }
  0x8d   : > { %v274_v33 = vmul.f32 %v266_v31, %v247_v26  ;;  %v254_v34 = vpop.xlane.xlu2 %253  ;;  %v272_v36 = vmul.f32 %v260_v32, %v247_v26 }
  0x8e   : > { %v270_v40 = vmul.f32 %v254_v34, %v247_v26 }
  0x8f   : > { %304 = vmatpush.msra.mxu0 %v274_v33  ;;  %530 = vmatpush.msra.mxu1 %v274_v33 }
  0x90   : > { %531 = vmatpush.msra.mxu2 %v274_v33  ;;  %532 = vmatpush.msra.mxu3 %v274_v33 }
  0x91   : > { %305 = vmatpush.msra.mxu0 %v273_v35  ;;  %533 = vmatpush.msra.mxu1 %v273_v35 }
  0x92   : > { %534 = vmatpush.msra.mxu2 %v273_v35  ;;  %535 = vmatpush.msra.mxu3 %v273_v35 }
  0x93   : > { %306 = vmatpush.msra.mxu0 %v272_v36  ;;  %536 = vmatpush.msra.mxu1 %v272_v36 }
  0x94   : > { %537 = vmatpush.msra.mxu2 %v272_v36  ;;  %538 = vmatpush.msra.mxu3 %v272_v36  ;;  %v240_v38 = vpop.xlane.xlu0 %239  ;;  %v237_v39 = vpop.xlane.xlu1 %236 }
  0x95   : > { %307 = vmatpush.msra.mxu0 %v271_v37  ;;  %539 = vmatpush.msra.mxu1 %v271_v37  ;;  %v234_v41 = vpop.xlane.xlu2 %233  ;;  %v251_v42 = vmul.f32 %v247_v26, %v240_v38  ;;  %v250_v43 = vmul.f32 %v247_v26, %v237_v39 }
  0x96   : > { %540 = vmatpush.msra.mxu2 %v271_v37  ;;  %541 = vmatpush.msra.mxu3 %v271_v37  ;;  %v249_v44 = vmul.f32 %v247_v26, %v234_v41 }
  0x97   : > { %308 = vmatpush.msra.mxu0 %v270_v40  ;;  %542 = vmatpush.msra.mxu1 %v270_v40 }
  0x98   : > { %543 = vmatpush.msra.mxu2 %v270_v40  ;;  %544 = vmatpush.msra.mxu3 %v270_v40 }
  0x99   : > { %309 = vmatpush.msra.mxu0 %v251_v42  ;;  %545 = vmatpush.msra.mxu1 %v251_v42 }
  0x9a   : > { %546 = vmatpush.msra.mxu2 %v251_v42  ;;  %547 = vmatpush.msra.mxu3 %v251_v42 }
  0x9b   : > { %310 = vmatpush.msra.mxu0 %v250_v43  ;;  %548 = vmatpush.msra.mxu1 %v250_v43 }
  0x9c   : > { %549 = vmatpush.msra.mxu2 %v250_v43  ;;  %550 = vmatpush.msra.mxu3 %v250_v43  ;;  %v231_v45 = vpop.xlane.xlu0 %230 }
  0x9d   : > { %v248_v46 = vmul.f32 %v247_v26, %v231_v45  ;;  %311 = vmatpush.msra.mxu0 %v249_v44  ;;  %551 = vmatpush.msra.mxu1 %v249_v44 }
  0x9e   : > { %552 = vmatpush.msra.mxu2 %v249_v44  ;;  %553 = vmatpush.msra.mxu3 %v249_v44 }
  0x9f   : > { %312 = vmatpush.msra.mxu0 %v248_v46  ;;  %554 = vmatpush.msra.mxu1 %v248_v46 }
  0xa0   : > { %555 = vmatpush.msra.mxu2 %v248_v46  ;;  %556 = vmatpush.msra.mxu3 %v248_v46 }
  0xa1   : > { %515 = vmatmul.msk.f32.vlgmr.msra.gmra.mxu0 %vm284_vm2, %v276_v47  ;;  %517 = vmatmul.msk.f32.vlgmr.msra.gmra.mxu2 %vm284_vm2, %v278_v48 }
  0xa2   : > { %516 = vmatmul.msk.f32.vlgmr.msra.gmra.mxu1 %vm284_vm2, %v277_v49  ;;  %518 = vmatmul.msk.f32.vlgmr.msra.gmra.mxu3 %vm284_vm2, %v279_v50 }
 0x11e   : > { %v314_v54 = vpop.f32.mrf.mxu0 }
 0x11f   : > { %v315_v55 = vadd.f32 %v314_v54, %v280_v52  ;;  %v317_v56 = vpop.f32.mrf.mxu1 }
 0x120   : > { %v318_v57 = vadd.f32 %v317_v56, %v281_v53 }
 0x121   : > { %v519_v58 = vmul.f32 -0.5, %v315_v55 }
 0x122   : > { %v520_v60 = vmul.f32 -0.5, %v318_v57 }
 0x123   : > { %v334_v61 = vmul.f32 1.442695, %v519_v58 }
 0x124   : > { %v320_v63 = vpop.f32.mrf.mxu2  ;;  %v336_v0 = vmul.f32 1.442695, %v520_v60 }
 0x125   : > { %573 = vpow2.f32 %v334_v61  ;;  %v321_v1 = vadd.f32 %v320_v63, %v282_v59  ;;  %v323_v2 = vpop.f32.mrf.mxu3 }
 0x126   : > { %575 = vpow2.f32 %v336_v0  ;;  %v324_v3 = vadd.f32 %v323_v2, %v283_v62 }
 0x127   : > { %v521_v4 = vmul.f32 -0.5, %v321_v1 }
 0x128   : > { %v522_v5 = vmul.f32 -0.5, %v324_v3 }
 0x129   : > { %v338_v6 = vmul.f32 1.442695, %v521_v4 }
 0x12a   : > { %v340_v7 = vmul.f32 1.442695, %v522_v5 }
 0x12b   : > { %v574_v8 = vpop.eup %573  ;;  %577 = vpow2.f32 %v338_v6 }
 0x12c   : > { %v576_v9 = vpop.eup %575  ;;  %v342_v10 = vadd.f32 1.0, %v574_v8  ;;  %579 = vpow2.f32 %v340_v7 }
 0x12d   : > { %v343_v11 = vadd.f32 1.0, %v576_v9 }
 0x12e   : > { %581 = vrcp.f32 %v342_v10  ;;  %v355_v23 = vand.u32 2147483647, %v342_v10  ;;  %v357_v24 = vand.u32 2147483648, %v342_v10  ;;  %vm351_vm5 = vweird.f32 %v342_v10 }
 0x12f   : > { %583 = vrcp.f32 %v343_v11  ;;  %v370_v27 = vand.u32 2147483647, %v343_v11  ;;  %v372_v28 = vand.u32 2147483648, %v343_v11  ;;  %vm366_vm3 = vweird.f32 %v343_v11 }
 0x130   : > { %vm690_vm7 = vcmp.eq.f32.partialorder %v355_v23, 8.507059e+37  ;;  %v358_v33 = vor.u32 1.1754944e-38, %v357_v24 }
 0x131   : > { %v578_v15 = vpop.eup %577  ;;  %vm698_vm9 = vcmp.eq.f32.partialorder %v370_v27, 8.507059e+37  ;;  %v373_v40 = vor.u32 1.1754944e-38, %v372_v28 }
 0x132   : > { %v580_v16 = vpop.eup %579  ;;  %v344_v17 = vadd.f32 1.0, %v578_v15 }
 0x133   : > { %v345_v19 = vadd.f32 1.0, %v580_v16 }
 0x134   : > { %v582_v20 = vpop.eup %581  ;;  %585 = vrcp.f32 %v344_v17  ;;  %v387_v41 = vand.u32 2147483648, %v344_v17  ;;  %v385_v52 = vand.u32 2147483647, %v344_v17  ;;  %vm381_vm14 = vweird.f32 %v344_v17 }
 0x135   : > { %v584_v21 = vpop.eup %583  ;;  %587 = vrcp.f32 %v345_v19  ;;  %v347_v22 = vmul.f32 %v582_v20, %v342_v10  ;;  %vm352_vm6 = vweird.f32 %v582_v20  ;;  %vm396_vm11 = vweird.f32 %v345_v19 }
 0x136   : > { %v362_v25 = vmul.f32 %v584_v21, %v343_v11  ;;  %vm367_vm4 = vweird.f32 %v584_v21  ;;  %vm353_vm10 = vmor %vm351_vm5, %vm352_vm6  ;;  %v400_v46 = vand.u32 2147483647, %v345_v19  ;;  %v402_v47 = vand.u32 2147483648, %v345_v19 }
 0x137   : > { %v348_v26 = vsub.f32 1.0, %v347_v22  ;;  %vm694_vm8 = vmor %vm366_vm3, %vm367_vm4  ;;  %v388_v57 = vor.u32 1.1754944e-38, %v387_v41  ;;  %vm386_vm3 = vcmp.eq.f32.partialorder %v385_v52, 8.507059e+37 }
 0x138   : > { %v363_v29 = vsub.f32 1.0, %v362_v25  ;;  %v403_v56 = vor.u32 1.1754944e-38, %v402_v47  ;;  %vm401_vm2 = vcmp.eq.f32.partialorder %v400_v46, 8.507059e+37 }
 0x139   : > { %v349_v30 = vmul.f32 %v582_v20, %v348_v26 }
 0x13a   : > { %v586_v31 = vpop.eup %585  ;;  %v364_v34 = vmul.f32 %v584_v21, %v363_v29 }
 0x13b   : > { %v588_v35 = vpop.eup %587  ;;  %v350_v36 = vadd.f32 %v582_v20, %v349_v30  ;;  %v377_v37 = vmul.f32 %v586_v31, %v344_v17  ;;  %vm382_vm13 = vweird.f32 %v586_v31 }
 0x13c   : > { %v365_v42 = vadd.f32 %v584_v21, %v364_v34  ;;  %v392_v43 = vmul.f32 %v588_v35, %v345_v19  ;;  %vm397_vm12 = vweird.f32 %v588_v35  ;;  %vm383_vm1 = vmor %vm381_vm14, %vm382_vm13 }
 0x13d   : > { %v354_v44 = vsel %vm353_vm10, %v582_v20, %v350_v36  ;;  %v378_v45 = vsub.f32 1.0, %v377_v37  ;;  %vm398_vm15 = vmor %vm396_vm11, %vm397_vm12 }
 0x13e   : > { %v359_v48 = vsel %vm690_vm7, %v358_v33, %v354_v44  ;;  %v369_v49 = vsel %vm694_vm8, %v584_v21, %v365_v42  ;;  %v393_v50 = vsub.f32 1.0, %v392_v43 }
 0x13f   : > { %408 = vperm.xlu1 %568, %v359_v48   ;;  %v379_v51 = vmul.f32 %v586_v31, %v378_v45  ;;  %v374_v53 = vsel %vm698_vm9, %v373_v40, %v369_v49 }
 0x140   : > { %413 = vperm.xlu2 %569, %v374_v53   ;;  %v394_v54 = vmul.f32 %v588_v35, %v393_v50 }
 0x141   : > { %v380_v55 = vadd.f32 %v586_v31, %v379_v51 }
 0x142   : > { %v395_v58 = vadd.f32 %v588_v35, %v394_v54 }
 0x143   : > { %v384_v59 = vsel %vm383_vm1, %v586_v31, %v380_v55 }
 0x144   : > { %v389_v60 = vsel %vm386_vm3, %v388_v57, %v384_v59  ;;  %v399_v61 = vsel %vm398_vm15, %v588_v35, %v395_v58 }
 0x145   : > { %418 = vperm.xlu0 %570, %v389_v60   ;;  %v404_v62 = vsel %vm401_vm2, %v403_v56, %v399_v61 }
 0x148   : > { %423 = vperm.xlu2 %569, %v404_v62  }
 0x19a   : > { %v414_v63 = vpop.permute.xlu2 %413 }
 0x19b   : > { %v427_v0 = vmul.f32 %v414_v63, %v654_v14 }
 0x19d   : > { %v431_v1 = vmax.f32 %v427_v0, 0.0 }
 0x19f   : > { %435 = vst.msk [vmem:[%s217_s19 + $0x8] sm:$0xff] %vm228_vm0, %v431_v1 }
 0x1a2   : > { %v424_v2 = vpop.permute.xlu2 %423 }
 0x1a3   : > { %v429_v3 = vmul.f32 %v424_v2, %v650_v12 }
 0x1a5   : > { %v433_v4 = vmax.f32 %v429_v3, 0.0 }
 0x1a7   : > { %437 = vst.msk [vmem:[%s217_s19 + $0x18] sm:$0xff] %vm228_vm0, %v433_v4 }
 0x1b1   : > { %v409_v5 = vpop.permute.xlu1 %408 }
 0x1b2   : > { %v426_v6 = vmul.f32 %v409_v5, %v662_v18 }
 0x1b4   : > { %v430_v7 = vmax.f32 %v426_v6, 0.0 }
 0x1b6   : > { %434 = vst.msk [vmem:[%s217_s19] sm:$0xff] %vm228_vm0, %v430_v7 }
 0x1b7   : > { %v419_v14 = vpop.permute.xlu0 %418 }
 0x1b8   : > { %v428_v8 = vmul.f32 %v419_v14, %v652_v13 }
 0x1ba   : > { %v432_v9 = vmax.f32 %v428_v8, 0.0 }
 0x1bc   : > { %436 = vst.msk [vmem:[%s217_s19 + $0x10] sm:$0xff] %vm228_vm0, %v432_v9 }
 0x1bd PF: > { %s14_s15 = sadd.s32 1, %s595_s15  }
 0x1be   : > { %p11_p4 = scmp.ge.s32.totalorder %s14_s15, 4  }
 0x1c0   :  { %13 = sbr.rel (!%p11_p4) target bundleno = 1 (0x1), region = 69 }

</bundles_post_ra>
